<compile_context>
chip_gen: v7x
topology: tpu7x:2x2x1
jax: 0.10.0
libtpu: 0.0.40
codegen_flags: <defaults>
</compile_context>

<pallas_src>
import functools

import jax
import jax.numpy as jnp
import numpy as np
from jax.experimental import pallas as pl
from jax.experimental.pallas import tpu as pltpu


# ----------------------------- Pallas kernel --------------------------------
def _make_avgpool_kernel(H, W, Hout, Wout, stride):
    """Build an unrolled VPU avg-pool kernel for a (H, W, C) channels-last block."""

    def taps(size):
        # For each output index: contributing input indices (padding=1, k=3,
        # clipped to the array) and the count_include_pad=False reciprocal.
        out = []
        for o in range((size - 1) // stride + 1):
            lo = o * stride - 1
            idx = [p for p in (lo, lo + 1, lo + 2) if 0 <= p < size]
            out.append((idx, 1.0 / len(idx)))
        return out

    row_taps = taps(H)   # length Hout
    col_taps = taps(W)   # length Wout
    assert len(row_taps) == Hout and len(col_taps) == Wout

    def kernel(x_ref, o_ref):
        # x_ref: (H, W, C)  o_ref: (Hout, Wout, C)   (C is the lane axis)
        x = x_ref[...].astype(jnp.float32)
        # ---- row pool (over H, an outer dim) at output-row resolution ----
        rows = []
        for idx, inv in row_taps:
            r = x[idx[0]]
            for h in idx[1:]:
                r = r + x[h]
            rows.append(r * inv)                       # (W, C)
        rp = jnp.stack(rows, axis=0)                   # (Hout, W, C)
        # ---- column pool (over W, the sublane dim); lanes (C) stay dense ----
        for j, (idx, inv) in enumerate(col_taps):
            v = rp[:, idx[0]:idx[0] + 1, :]            # (Hout, 1, C)
            for w in idx[1:]:
                v = v + rp[:, w:w + 1, :]
            o_ref[:, j:j + 1, :] = (v * inv).astype(o_ref.dtype)

    return kernel


def _pick_channel_block(C, H, W, Hout, Wout):
    """Lane-dim block size: must equal C or be a multiple of 128 dividing C.

    Budget ~8 MiB of double-buffered in+out f32 so the same tiling is safe on
    v5e (16 MiB scoped default), v6e (32 MiB) and v7x (32 MiB of 64 MiB)."""
    if C % 128 != 0:
        return C
    per_ch_bytes = 4 * (H * W + Hout * Wout)
    budget = 8 << 20
    best = 128
    for cb in range(128, C + 1, 128):
        if C % cb == 0 and 2 * cb * per_ch_bytes <= budget:
            best = cb
    return best


@functools.lru_cache(maxsize=None)
def _build_pool_call(N, C, H, W, stride, dtype_name):
    dtype = jnp.dtype(dtype_name)
    Hout = (H - 1) // stride + 1
    Wout = (W - 1) // stride + 1
    Cb = _pick_channel_block(C, H, W, Hout, Wout)
    kernel = _make_avgpool_kernel(H, W, Hout, Wout, stride)
    grid = (N, C // Cb)
    return pl.pallas_call(
        kernel,
        out_shape=jax.ShapeDtypeStruct((N, Hout, Wout, C), dtype),
        grid=grid,
        in_specs=[pl.BlockSpec((None, H, W, Cb), lambda n, g: (n, 0, 0, g))],
        out_specs=pl.BlockSpec((None, Hout, Wout, Cb), lambda n, g: (n, 0, 0, g)),
        compiler_params=pltpu.CompilerParams(
            dimension_semantics=("parallel", "parallel")),
    )


def _avgpool2d_pallas(x, stride):
    """AvgPool2d(3, stride, padding=1, count_include_pad=False) on NCHW input."""
    N, C, H, W = x.shape
    x_t = jnp.transpose(x, (0, 2, 3, 1))                 # NHWC: channels on lanes
    call = _build_pool_call(N, C, H, W, stride, jnp.dtype(x.dtype).name)
    out_t = call(x_t)                                    # (N, Hout, Wout, C)
    return jnp.transpose(out_t, (0, 3, 1, 2))            # back to NCHW


class AvgPoolLayer:
    """JAX/Pallas port of the PyTorch AvgPoolLayer (no learnable parameters).

    The PyTorch module splits channels into `splits` groups, pools each with
    an identical parameter-free AvgPool2d and concatenates -> identical to
    pooling all channels at once, so we run a single fused kernel."""

    def __init__(self, C, stride, affine=True, splits=4):
        self.C = C
        self.stride = stride
        self.splits = splits

    def __call__(self, x):
        return _avgpool2d_pallas(x, self.stride)


# ----------------------------- pure-JAX reference ---------------------------
def _avgpool2d_ref(x, stride):
    pads = [(0, 0), (0, 0), (1, 1), (1, 1)]
    sums = jax.lax.reduce_window(x, 0.0, jax.lax.add,
                                 (1, 1, 3, 3), (1, 1, stride, stride), pads)
    cnts = jax.lax.reduce_window(jnp.ones_like(x), 0.0, jax.lax.add,
                                 (1, 1, 3, 3), (1, 1, stride, stride), pads)
    return sums / cnts


if __name__ == "__main__":
    N, C, H, W = 2, 8, 16, 16
    stride = 2
    splits = 4

    key = jax.random.PRNGKey(0)
    x = jax.random.normal(key, (N, C, H, W), dtype=jnp.float32)

    layer = AvgPoolLayer(C, stride=stride, affine=True, splits=splits)
    out = jax.block_until_ready(layer(x))

    ref = jax.block_until_ready(_avgpool2d_ref(x, stride))
    assert out.shape == ref.shape, (out.shape, ref.shape)
    np.testing.assert_allclose(np.asarray(out), np.asarray(ref), rtol=1e-5, atol=1e-5)

    print("KERNEL_OK")
</pallas_src>

<mosaic_0001>
module attributes {stable_mosaic.version = 11 : i64} {
  func.func @kernel(%arg0: i32, %arg1: i32, %arg2: memref<1x16x16x8xf32, #tpu.memory_space<vmem>>, %arg3: memref<1x8x8x8xf32, #tpu.memory_space<vmem>>) attributes {dimension_semantics = [#tpu.dimension_semantics<parallel>, #tpu.dimension_semantics<parallel>], iteration_bounds = array<i64: 2, 1>, scalar_prefetch = 0 : i64, scratch_operands = 0 : i64, tpu.core_type = #tpu.core_type<tc>, window_params = [{transform_indices = @transform_0, window_bounds = array<i64: 1, 16, 16, 8>}, {transform_indices = @transform_1, window_bounds = array<i64: 1, 8, 8, 8>}]} {
    %c0 = arith.constant 0 : index
    %c0_0 = arith.constant 0 : index
    %c0_1 = arith.constant 0 : index
    %c0_2 = arith.constant 0 : index
    %0 = vector.load %arg2[%c0, %c0_0, %c0_1, %c0_2] : memref<1x16x16x8xf32, #tpu.memory_space<vmem>>, vector<1x16x16x8xf32>
    %1 = vector.shape_cast %0 : vector<1x16x16x8xf32> to vector<16x16x8xf32>
    %2 = vector.extract_strided_slice %1 {offsets = [0, 0, 0], sizes = [1, 16, 8], strides = [1, 1, 1]} : vector<16x16x8xf32> to vector<1x16x8xf32>
    %3 = vector.shape_cast %2 : vector<1x16x8xf32> to vector<16x8xf32>
    %4 = vector.extract_strided_slice %1 {offsets = [1, 0, 0], sizes = [1, 16, 8], strides = [1, 1, 1]} : vector<16x16x8xf32> to vector<1x16x8xf32>
    %5 = vector.shape_cast %4 : vector<1x16x8xf32> to vector<16x8xf32>
    %6 = arith.addf %3, %5 : vector<16x8xf32>
    %cst = arith.constant 5.000000e-01 : f32
    %7 = vector.broadcast %cst : f32 to vector<16x8xf32>
    %8 = arith.mulf %6, %7 : vector<16x8xf32>
    %9 = vector.extract_strided_slice %1 {offsets = [1, 0, 0], sizes = [1, 16, 8], strides = [1, 1, 1]} : vector<16x16x8xf32> to vector<1x16x8xf32>
    %10 = vector.shape_cast %9 : vector<1x16x8xf32> to vector<16x8xf32>
    %11 = vector.extract_strided_slice %1 {offsets = [2, 0, 0], sizes = [1, 16, 8], strides = [1, 1, 1]} : vector<16x16x8xf32> to vector<1x16x8xf32>
    %12 = vector.shape_cast %11 : vector<1x16x8xf32> to vector<16x8xf32>
    %13 = arith.addf %10, %12 : vector<16x8xf32>
    %14 = vector.extract_strided_slice %1 {offsets = [3, 0, 0], sizes = [1, 16, 8], strides = [1, 1, 1]} : vector<16x16x8xf32> to vector<1x16x8xf32>
    %15 = vector.shape_cast %14 : vector<1x16x8xf32> to vector<16x8xf32>
    %16 = arith.addf %13, %15 : vector<16x8xf32>
    %cst_3 = arith.constant 0.333333343 : f32
    %17 = vector.broadcast %cst_3 : f32 to vector<16x8xf32>
    %18 = arith.mulf %16, %17 : vector<16x8xf32>
    %19 = vector.extract_strided_slice %1 {offsets = [3, 0, 0], sizes = [1, 16, 8], strides = [1, 1, 1]} : vector<16x16x8xf32> to vector<1x16x8xf32>
    %20 = vector.shape_cast %19 : vector<1x16x8xf32> to vector<16x8xf32>
    %21 = vector.extract_strided_slice %1 {offsets = [4, 0, 0], sizes = [1, 16, 8], strides = [1, 1, 1]} : vector<16x16x8xf32> to vector<1x16x8xf32>
    %22 = vector.shape_cast %21 : vector<1x16x8xf32> to vector<16x8xf32>
    %23 = arith.addf %20, %22 : vector<16x8xf32>
    %24 = vector.extract_strided_slice %1 {offsets = [5, 0, 0], sizes = [1, 16, 8], strides = [1, 1, 1]} : vector<16x16x8xf32> to vector<1x16x8xf32>
    %25 = vector.shape_cast %24 : vector<1x16x8xf32> to vector<16x8xf32>
    %26 = arith.addf %23, %25 : vector<16x8xf32>
    %cst_4 = arith.constant 0.333333343 : f32
    %27 = vector.broadcast %cst_4 : f32 to vector<16x8xf32>
    %28 = arith.mulf %26, %27 : vector<16x8xf32>
    %29 = vector.extract_strided_slice %1 {offsets = [5, 0, 0], sizes = [1, 16, 8], strides = [1, 1, 1]} : vector<16x16x8xf32> to vector<1x16x8xf32>
    %30 = vector.shape_cast %29 : vector<1x16x8xf32> to vector<16x8xf32>
    %31 = vector.extract_strided_slice %1 {offsets = [6, 0, 0], sizes = [1, 16, 8], strides = [1, 1, 1]} : vector<16x16x8xf32> to vector<1x16x8xf32>
    %32 = vector.shape_cast %31 : vector<1x16x8xf32> to vector<16x8xf32>
    %33 = arith.addf %30, %32 : vector<16x8xf32>
    %34 = vector.extract_strided_slice %1 {offsets = [7, 0, 0], sizes = [1, 16, 8], strides = [1, 1, 1]} : vector<16x16x8xf32> to vector<1x16x8xf32>
    %35 = vector.shape_cast %34 : vector<1x16x8xf32> to vector<16x8xf32>
    %36 = arith.addf %33, %35 : vector<16x8xf32>
    %cst_5 = arith.constant 0.333333343 : f32
    %37 = vector.broadcast %cst_5 : f32 to vector<16x8xf32>
    %38 = arith.mulf %36, %37 : vector<16x8xf32>
    %39 = vector.extract_strided_slice %1 {offsets = [7, 0, 0], sizes = [1, 16, 8], strides = [1, 1, 1]} : vector<16x16x8xf32> to vector<1x16x8xf32>
    %40 = vector.shape_cast %39 : vector<1x16x8xf32> to vector<16x8xf32>
    %41 = vector.extract_strided_slice %1 {offsets = [8, 0, 0], sizes = [1, 16, 8], strides = [1, 1, 1]} : vector<16x16x8xf32> to vector<1x16x8xf32>
    %42 = vector.shape_cast %41 : vector<1x16x8xf32> to vector<16x8xf32>
    %43 = arith.addf %40, %42 : vector<16x8xf32>
    %44 = vector.extract_strided_slice %1 {offsets = [9, 0, 0], sizes = [1, 16, 8], strides = [1, 1, 1]} : vector<16x16x8xf32> to vector<1x16x8xf32>
    %45 = vector.shape_cast %44 : vector<1x16x8xf32> to vector<16x8xf32>
    %46 = arith.addf %43, %45 : vector<16x8xf32>
    %cst_6 = arith.constant 0.333333343 : f32
    %47 = vector.broadcast %cst_6 : f32 to vector<16x8xf32>
    %48 = arith.mulf %46, %47 : vector<16x8xf32>
    %49 = vector.extract_strided_slice %1 {offsets = [9, 0, 0], sizes = [1, 16, 8], strides = [1, 1, 1]} : vector<16x16x8xf32> to vector<1x16x8xf32>
    %50 = vector.shape_cast %49 : vector<1x16x8xf32> to vector<16x8xf32>
    %51 = vector.extract_strided_slice %1 {offsets = [10, 0, 0], sizes = [1, 16, 8], strides = [1, 1, 1]} : vector<16x16x8xf32> to vector<1x16x8xf32>
    %52 = vector.shape_cast %51 : vector<1x16x8xf32> to vector<16x8xf32>
    %53 = arith.addf %50, %52 : vector<16x8xf32>
    %54 = vector.extract_strided_slice %1 {offsets = [11, 0, 0], sizes = [1, 16, 8], strides = [1, 1, 1]} : vector<16x16x8xf32> to vector<1x16x8xf32>
    %55 = vector.shape_cast %54 : vector<1x16x8xf32> to vector<16x8xf32>
    %56 = arith.addf %53, %55 : vector<16x8xf32>
    %cst_7 = arith.constant 0.333333343 : f32
    %57 = vector.broadcast %cst_7 : f32 to vector<16x8xf32>
    %58 = arith.mulf %56, %57 : vector<16x8xf32>
    %59 = vector.extract_strided_slice %1 {offsets = [11, 0, 0], sizes = [1, 16, 8], strides = [1, 1, 1]} : vector<16x16x8xf32> to vector<1x16x8xf32>
    %60 = vector.shape_cast %59 : vector<1x16x8xf32> to vector<16x8xf32>
    %61 = vector.extract_strided_slice %1 {offsets = [12, 0, 0], sizes = [1, 16, 8], strides = [1, 1, 1]} : vector<16x16x8xf32> to vector<1x16x8xf32>
    %62 = vector.shape_cast %61 : vector<1x16x8xf32> to vector<16x8xf32>
    %63 = arith.addf %60, %62 : vector<16x8xf32>
    %64 = vector.extract_strided_slice %1 {offsets = [13, 0, 0], sizes = [1, 16, 8], strides = [1, 1, 1]} : vector<16x16x8xf32> to vector<1x16x8xf32>
    %65 = vector.shape_cast %64 : vector<1x16x8xf32> to vector<16x8xf32>
    %66 = arith.addf %63, %65 : vector<16x8xf32>
    %cst_8 = arith.constant 0.333333343 : f32
    %67 = vector.broadcast %cst_8 : f32 to vector<16x8xf32>
    %68 = arith.mulf %66, %67 : vector<16x8xf32>
    %69 = vector.extract_strided_slice %1 {offsets = [13, 0, 0], sizes = [1, 16, 8], strides = [1, 1, 1]} : vector<16x16x8xf32> to vector<1x16x8xf32>
    %70 = vector.shape_cast %69 : vector<1x16x8xf32> to vector<16x8xf32>
    %71 = vector.extract_strided_slice %1 {offsets = [14, 0, 0], sizes = [1, 16, 8], strides = [1, 1, 1]} : vector<16x16x8xf32> to vector<1x16x8xf32>
    %72 = vector.shape_cast %71 : vector<1x16x8xf32> to vector<16x8xf32>
    %73 = arith.addf %70, %72 : vector<16x8xf32>
    %74 = vector.extract_strided_slice %1 {offsets = [15, 0, 0], sizes = [1, 16, 8], strides = [1, 1, 1]} : vector<16x16x8xf32> to vector<1x16x8xf32>
    %75 = vector.shape_cast %74 : vector<1x16x8xf32> to vector<16x8xf32>
    %76 = arith.addf %73, %75 : vector<16x8xf32>
    %cst_9 = arith.constant 0.333333343 : f32
    %77 = vector.broadcast %cst_9 : f32 to vector<16x8xf32>
    %78 = arith.mulf %76, %77 : vector<16x8xf32>
    %79 = vector.shape_cast %8 : vector<16x8xf32> to vector<1x16x8xf32>
    %80 = vector.shape_cast %18 : vector<16x8xf32> to vector<1x16x8xf32>
    %81 = vector.shape_cast %28 : vector<16x8xf32> to vector<1x16x8xf32>
    %82 = vector.shape_cast %38 : vector<16x8xf32> to vector<1x16x8xf32>
    %83 = vector.shape_cast %48 : vector<16x8xf32> to vector<1x16x8xf32>
    %84 = vector.shape_cast %58 : vector<16x8xf32> to vector<1x16x8xf32>
    %85 = vector.shape_cast %68 : vector<16x8xf32> to vector<1x16x8xf32>
    %86 = vector.shape_cast %78 : vector<16x8xf32> to vector<1x16x8xf32>
    %87 = tpu.concatenate %79, %80, %81, %82, %83, %84, %85, %86 in 0 : vector<1x16x8xf32>, vector<1x16x8xf32>, vector<1x16x8xf32>, vector<1x16x8xf32>, vector<1x16x8xf32>, vector<1x16x8xf32>, vector<1x16x8xf32>, vector<1x16x8xf32> -> vector<8x16x8xf32>
    %88 = vector.extract_strided_slice %87 {offsets = [0, 0, 0], sizes = [8, 1, 8], strides = [1, 1, 1]} : vector<8x16x8xf32> to vector<8x1x8xf32>
    %89 = vector.extract_strided_slice %87 {offsets = [0, 1, 0], sizes = [8, 1, 8], strides = [1, 1, 1]} : vector<8x16x8xf32> to vector<8x1x8xf32>
    %90 = arith.addf %88, %89 : vector<8x1x8xf32>
    %cst_10 = arith.constant 5.000000e-01 : f32
    %91 = vector.broadcast %cst_10 : f32 to vector<8x1x8xf32>
    %92 = arith.mulf %90, %91 : vector<8x1x8xf32>
    %c0_11 = arith.constant 0 : index
    %c0_12 = arith.constant 0 : index
    %c0_13 = arith.constant 0 : index
    %c0_14 = arith.constant 0 : index
    %93 = vector.load %arg3[%c0_11, %c0_12, %c0_13, %c0_14] : memref<1x8x8x8xf32, #tpu.memory_space<vmem>>, vector<1x8x1x8xf32>
    %94 = vector.shape_cast %93 : vector<1x8x1x8xf32> to vector<8x1x8xf32>
    %95 = vector.shape_cast %92 : vector<8x1x8xf32> to vector<1x8x1x8xf32>
    tpu.vector_store %arg3[%c0_11, %c0_12, %c0_13, %c0_14], %95 {strides = array<i32>} : memref<1x8x8x8xf32, #tpu.memory_space<vmem>>, vector<1x8x1x8xf32>,
    %96 = vector.extract_strided_slice %87 {offsets = [0, 1, 0], sizes = [8, 1, 8], strides = [1, 1, 1]} : vector<8x16x8xf32> to vector<8x1x8xf32>
    %97 = vector.extract_strided_slice %87 {offsets = [0, 2, 0], sizes = [8, 1, 8], strides = [1, 1, 1]} : vector<8x16x8xf32> to vector<8x1x8xf32>
    %98 = arith.addf %96, %97 : vector<8x1x8xf32>
    %99 = vector.extract_strided_slice %87 {offsets = [0, 3, 0], sizes = [8, 1, 8], strides = [1, 1, 1]} : vector<8x16x8xf32> to vector<8x1x8xf32>
    %100 = arith.addf %98, %99 : vector<8x1x8xf32>
    %cst_15 = arith.constant 0.333333343 : f32
    %101 = vector.broadcast %cst_15 : f32 to vector<8x1x8xf32>
    %102 = arith.mulf %100, %101 : vector<8x1x8xf32>
    %c0_16 = arith.constant 0 : index
    %c0_17 = arith.constant 0 : index
    %c1 = arith.constant 1 : index
    %c0_18 = arith.constant 0 : index
    %103 = vector.load %arg3[%c0_16, %c0_17, %c1, %c0_18] : memref<1x8x8x8xf32, #tpu.memory_space<vmem>>, vector<1x8x1x8xf32>
    %104 = vector.shape_cast %103 : vector<1x8x1x8xf32> to vector<8x1x8xf32>
    %105 = vector.shape_cast %102 : vector<8x1x8xf32> to vector<1x8x1x8xf32>
    tpu.vector_store %arg3[%c0_16, %c0_17, %c1, %c0_18], %105 {strides = array<i32>} : memref<1x8x8x8xf32, #tpu.memory_space<vmem>>, vector<1x8x1x8xf32>,
    %106 = vector.extract_strided_slice %87 {offsets = [0, 3, 0], sizes = [8, 1, 8], strides = [1, 1, 1]} : vector<8x16x8xf32> to vector<8x1x8xf32>
    %107 = vector.extract_strided_slice %87 {offsets = [0, 4, 0], sizes = [8, 1, 8], strides = [1, 1, 1]} : vector<8x16x8xf32> to vector<8x1x8xf32>
    %108 = arith.addf %106, %107 : vector<8x1x8xf32>
    %109 = vector.extract_strided_slice %87 {offsets = [0, 5, 0], sizes = [8, 1, 8], strides = [1, 1, 1]} : vector<8x16x8xf32> to vector<8x1x8xf32>
    %110 = arith.addf %108, %109 : vector<8x1x8xf32>
    %cst_19 = arith.constant 0.333333343 : f32
    %111 = vector.broadcast %cst_19 : f32 to vector<8x1x8xf32>
    %112 = arith.mulf %110, %111 : vector<8x1x8xf32>
    %c0_20 = arith.constant 0 : index
    %c0_21 = arith.constant 0 : index
    %c2 = arith.constant 2 : index
    %c0_22 = arith.constant 0 : index
    %113 = vector.load %arg3[%c0_20, %c0_21, %c2, %c0_22] : memref<1x8x8x8xf32, #tpu.memory_space<vmem>>, vector<1x8x1x8xf32>
    %114 = vector.shape_cast %113 : vector<1x8x1x8xf32> to vector<8x1x8xf32>
    %115 = vector.shape_cast %112 : vector<8x1x8xf32> to vector<1x8x1x8xf32>
    tpu.vector_store %arg3[%c0_20, %c0_21, %c2, %c0_22], %115 {strides = array<i32>} : memref<1x8x8x8xf32, #tpu.memory_space<vmem>>, vector<1x8x1x8xf32>,
    %116 = vector.extract_strided_slice %87 {offsets = [0, 5, 0], sizes = [8, 1, 8], strides = [1, 1, 1]} : vector<8x16x8xf32> to vector<8x1x8xf32>
    %117 = vector.extract_strided_slice %87 {offsets = [0, 6, 0], sizes = [8, 1, 8], strides = [1, 1, 1]} : vector<8x16x8xf32> to vector<8x1x8xf32>
    %118 = arith.addf %116, %117 : vector<8x1x8xf32>
    %119 = vector.extract_strided_slice %87 {offsets = [0, 7, 0], sizes = [8, 1, 8], strides = [1, 1, 1]} : vector<8x16x8xf32> to vector<8x1x8xf32>
    %120 = arith.addf %118, %119 : vector<8x1x8xf32>
    %cst_23 = arith.constant 0.333333343 : f32
    %121 = vector.broadcast %cst_23 : f32 to vector<8x1x8xf32>
    %122 = arith.mulf %120, %121 : vector<8x1x8xf32>
    %c0_24 = arith.constant 0 : index
    %c0_25 = arith.constant 0 : index
    %c3 = arith.constant 3 : index
    %c0_26 = arith.constant 0 : index
    %123 = vector.load %arg3[%c0_24, %c0_25, %c3, %c0_26] : memref<1x8x8x8xf32, #tpu.memory_space<vmem>>, vector<1x8x1x8xf32>
    %124 = vector.shape_cast %123 : vector<1x8x1x8xf32> to vector<8x1x8xf32>
    %125 = vector.shape_cast %122 : vector<8x1x8xf32> to vector<1x8x1x8xf32>
    tpu.vector_store %arg3[%c0_24, %c0_25, %c3, %c0_26], %125 {strides = array<i32>} : memref<1x8x8x8xf32, #tpu.memory_space<vmem>>, vector<1x8x1x8xf32>,
    %126 = vector.extract_strided_slice %87 {offsets = [0, 7, 0], sizes = [8, 1, 8], strides = [1, 1, 1]} : vector<8x16x8xf32> to vector<8x1x8xf32>
    %127 = vector.extract_strided_slice %87 {offsets = [0, 8, 0], sizes = [8, 1, 8], strides = [1, 1, 1]} : vector<8x16x8xf32> to vector<8x1x8xf32>
    %128 = arith.addf %126, %127 : vector<8x1x8xf32>
    %129 = vector.extract_strided_slice %87 {offsets = [0, 9, 0], sizes = [8, 1, 8], strides = [1, 1, 1]} : vector<8x16x8xf32> to vector<8x1x8xf32>
    %130 = arith.addf %128, %129 : vector<8x1x8xf32>
    %cst_27 = arith.constant 0.333333343 : f32
    %131 = vector.broadcast %cst_27 : f32 to vector<8x1x8xf32>
    %132 = arith.mulf %130, %131 : vector<8x1x8xf32>
    %c0_28 = arith.constant 0 : index
    %c0_29 = arith.constant 0 : index
    %c4 = arith.constant 4 : index
    %c0_30 = arith.constant 0 : index
    %133 = vector.load %arg3[%c0_28, %c0_29, %c4, %c0_30] : memref<1x8x8x8xf32, #tpu.memory_space<vmem>>, vector<1x8x1x8xf32>
    %134 = vector.shape_cast %133 : vector<1x8x1x8xf32> to vector<8x1x8xf32>
    %135 = vector.shape_cast %132 : vector<8x1x8xf32> to vector<1x8x1x8xf32>
    tpu.vector_store %arg3[%c0_28, %c0_29, %c4, %c0_30], %135 {strides = array<i32>} : memref<1x8x8x8xf32, #tpu.memory_space<vmem>>, vector<1x8x1x8xf32>,
    %136 = vector.extract_strided_slice %87 {offsets = [0, 9, 0], sizes = [8, 1, 8], strides = [1, 1, 1]} : vector<8x16x8xf32> to vector<8x1x8xf32>
    %137 = vector.extract_strided_slice %87 {offsets = [0, 10, 0], sizes = [8, 1, 8], strides = [1, 1, 1]} : vector<8x16x8xf32> to vector<8x1x8xf32>
    %138 = arith.addf %136, %137 : vector<8x1x8xf32>
    %139 = vector.extract_strided_slice %87 {offsets = [0, 11, 0], sizes = [8, 1, 8], strides = [1, 1, 1]} : vector<8x16x8xf32> to vector<8x1x8xf32>
    %140 = arith.addf %138, %139 : vector<8x1x8xf32>
    %cst_31 = arith.constant 0.333333343 : f32
    %141 = vector.broadcast %cst_31 : f32 to vector<8x1x8xf32>
    %142 = arith.mulf %140, %141 : vector<8x1x8xf32>
    %c0_32 = arith.constant 0 : index
    %c0_33 = arith.constant 0 : index
    %c5 = arith.constant 5 : index
    %c0_34 = arith.constant 0 : index
    %143 = vector.load %arg3[%c0_32, %c0_33, %c5, %c0_34] : memref<1x8x8x8xf32, #tpu.memory_space<vmem>>, vector<1x8x1x8xf32>
    %144 = vector.shape_cast %143 : vector<1x8x1x8xf32> to vector<8x1x8xf32>
    %145 = vector.shape_cast %142 : vector<8x1x8xf32> to vector<1x8x1x8xf32>
    tpu.vector_store %arg3[%c0_32, %c0_33, %c5, %c0_34], %145 {strides = array<i32>} : memref<1x8x8x8xf32, #tpu.memory_space<vmem>>, vector<1x8x1x8xf32>,
    %146 = vector.extract_strided_slice %87 {offsets = [0, 11, 0], sizes = [8, 1, 8], strides = [1, 1, 1]} : vector<8x16x8xf32> to vector<8x1x8xf32>
    %147 = vector.extract_strided_slice %87 {offsets = [0, 12, 0], sizes = [8, 1, 8], strides = [1, 1, 1]} : vector<8x16x8xf32> to vector<8x1x8xf32>
    %148 = arith.addf %146, %147 : vector<8x1x8xf32>
    %149 = vector.extract_strided_slice %87 {offsets = [0, 13, 0], sizes = [8, 1, 8], strides = [1, 1, 1]} : vector<8x16x8xf32> to vector<8x1x8xf32>
    %150 = arith.addf %148, %149 : vector<8x1x8xf32>
    %cst_35 = arith.constant 0.333333343 : f32
    %151 = vector.broadcast %cst_35 : f32 to vector<8x1x8xf32>
    %152 = arith.mulf %150, %151 : vector<8x1x8xf32>
    %c0_36 = arith.constant 0 : index
    %c0_37 = arith.constant 0 : index
    %c6 = arith.constant 6 : index
    %c0_38 = arith.constant 0 : index
    %153 = vector.load %arg3[%c0_36, %c0_37, %c6, %c0_38] : memref<1x8x8x8xf32, #tpu.memory_space<vmem>>, vector<1x8x1x8xf32>
    %154 = vector.shape_cast %153 : vector<1x8x1x8xf32> to vector<8x1x8xf32>
    %155 = vector.shape_cast %152 : vector<8x1x8xf32> to vector<1x8x1x8xf32>
    tpu.vector_store %arg3[%c0_36, %c0_37, %c6, %c0_38], %155 {strides = array<i32>} : memref<1x8x8x8xf32, #tpu.memory_space<vmem>>, vector<1x8x1x8xf32>,
    %156 = vector.extract_strided_slice %87 {offsets = [0, 13, 0], sizes = [8, 1, 8], strides = [1, 1, 1]} : vector<8x16x8xf32> to vector<8x1x8xf32>
    %157 = vector.extract_strided_slice %87 {offsets = [0, 14, 0], sizes = [8, 1, 8], strides = [1, 1, 1]} : vector<8x16x8xf32> to vector<8x1x8xf32>
    %158 = arith.addf %156, %157 : vector<8x1x8xf32>
    %159 = vector.extract_strided_slice %87 {offsets = [0, 15, 0], sizes = [8, 1, 8], strides = [1, 1, 1]} : vector<8x16x8xf32> to vector<8x1x8xf32>
    %160 = arith.addf %158, %159 : vector<8x1x8xf32>
    %cst_39 = arith.constant 0.333333343 : f32
    %161 = vector.broadcast %cst_39 : f32 to vector<8x1x8xf32>
    %162 = arith.mulf %160, %161 : vector<8x1x8xf32>
    %c0_40 = arith.constant 0 : index
    %c0_41 = arith.constant 0 : index
    %c7 = arith.constant 7 : index
    %c0_42 = arith.constant 0 : index
    %163 = vector.load %arg3[%c0_40, %c0_41, %c7, %c0_42] : memref<1x8x8x8xf32, #tpu.memory_space<vmem>>, vector<1x8x1x8xf32>
    %164 = vector.shape_cast %163 : vector<1x8x1x8xf32> to vector<8x1x8xf32>
    %165 = vector.shape_cast %162 : vector<8x1x8xf32> to vector<1x8x1x8xf32>
    tpu.vector_store %arg3[%c0_40, %c0_41, %c7, %c0_42], %165 {strides = array<i32>} : memref<1x8x8x8xf32, #tpu.memory_space<vmem>>, vector<1x8x1x8xf32>,
    return
  }
  func.func @transform_0(%arg0: i32, %arg1: i32) -> (i32, i32, i32, i32) {
    %c0_i32 = arith.constant 0 : i32
    %c0_i32_0 = arith.constant 0 : i32
    %c0_i32_1 = arith.constant 0 : i32
    return %arg0, %c0_i32, %c0_i32_0, %arg1 : i32, i32, i32, i32
  }
  func.func @transform_1(%arg0: i32, %arg1: i32) -> (i32, i32, i32, i32) {
    %c0_i32 = arith.constant 0 : i32
    %c0_i32_0 = arith.constant 0 : i32
    %c0_i32_1 = arith.constant 0 : i32
    return %arg0, %c0_i32, %c0_i32_0, %arg1 : i32, i32, i32, i32
  }
}

</mosaic_0001>

<bundles_post_ra>
// kernel: tpu_custom_call.1
= control target key start
LH: loop header
LB: loop body
LE: loop exit
PB: predicated region body
PF: predicated region fallthrough
CT: control target
= control target key end

     0   :  { %6 = vsyncpa [#allocation3], 0  ;;  %s1047_s0 = inlined_call_operand.vmem [shape: f32[2,16,16,8], index: 0, kind: input, shape index: {}]   ;;  %s1048_s1 = inlined_call_operand.hbm [shape: f32[2,8,8,8], index: 1, kind: output, shape index: {}]  }
   0x1   :  { %8 = vsyncpa [#allocation3 + $0x1], 0  ;;  %s705_s6 = smov 0   ;;  %s707_s7 = smov 0  }
   0x2   :  { %s709_s8 = smov 0   ;;  %s711_s9 = smov 0  }
   0x3   :  { %s713_s10 = smov 0   ;;  %s715_s11 = smov 0  }
   0x4 LB: > { %s540_s12 = sadd.s32 4294967295, %s690_s11   ;;  %s541_s13 = sadd.s32 4294967294, %s690_s11   ;;  %s690_s11 = sphi %s715_s11, %s14_s11   ;;  %s686_s10 = sphi %s713_s10, %s1055_s10   ;;  %s682_s9 = sphi %s711_s9, %s1054_s9   ;;  %s678_s8 = sphi %s709_s8, %s1053_s8   ;;  %s674_s7 = sphi %s707_s7, %s1052_s7   ;;  %s670_s6 = sphi %s705_s6, %s1051_s6  }
   0x5   : > { %s26_s14 = sadd.s32 1, %s686_s10  ;;  %s63_s15 = sadd.s32 1, %s678_s8 }
   0x6   : > { %p28_p0 = scmp.ge.s32.totalorder %s26_s14, 2  ;;  %p73_p1 = scmp.ne.s32.totalorder %s678_s8, %s674_s7 }
   0x7   : > { %p74_p2 = scmp.eq.s32.totalorder %s540_s12, 1  ;;  %p79_p3 = scmp.ne.s32.totalorder %s674_s7, %s670_s6 }
   0x8   : > { %s1057_s14 = smov (%p28_p0, %s26_s14), 0  ;;  %p80_p5 = scmp.eq.s32.totalorder %s541_s13, 1 }
   0x9   : > { %p745_p4 = por %p74_p2, %p73_p1  ;;  %s58_s17 = ssub.s32 %s686_s10, %s1057_s14 }
   0xa   : > { %p544_p6 = scmp.ge.s32.totalorder %s690_s11, 1  ;;  %p61_p7 = scmp.eq.s32.totalorder %s58_s17, 0 }
   0xb   : > { %p752_p8 = por %p80_p5, %p79_p3  ;;  %p109_p9 = scmp.lt.s32.totalorder %s690_s11, 3 }
   0xc   : > { %s758_s19 = scalar_select %p61_p7, %s678_s8, %s63_s15  }
   0xd   : > { %p110_p10 = pnand %p544_p6, %p109_p9 }
   0xe   : > { %p132_p11 = scmp.lt.s32.totalorder (!%p110_p10), %s682_s9, 1  ;;  %s129_s25 = sand.u32 (!%p110_p10), 1, %s674_s7   ;;  %vm258_vm0 = vcmask (!%p110_p10), 57344   ;;  %vm299_vm1 = vcmask (!%p110_p10), 58369   ;;  %vm308_vm2 = vcmask (!%p110_p10), 60419   ;;  %vm317_vm3 = vcmask (!%p110_p10), 62469  }
   0xf   : > { %113 = sbr.rel (%p110_p10) target bundleno = 99 (0x63), region = 24  ;;  %s545_s26 = sshll.u32 (!%p110_p10), %s129_s25, 6  ;;  %vm390_vm4 = vcmask (!%p110_p10), 64519  }
  0x10   : > { %s811_s27 = scalar_lea.vmem (!%p110_p10), [#allocation2], %s545_s26  ;;  %s554_s28 = sshll.u32 (!%p110_p10), %s682_s9, 10 }
  0x11   : > { %s462_s29 = sshll.u32 (!%p110_p10), %s811_s27, 4  ;;  %s977_s3 = scalar_lea.hbm (!%p110_p10), %s1048_s1, %s554_s28  ;;  %s979_s29 = int_to_ptr.vmem [resolvable:$true] %s462_s29 }
  0x12   : > { %s1001_s4 = scalar_lea.sflag (!%p110_p10), [#allocation3], %s129_s25  ;;  %s612_s5 = scalar_lea.vmem (!%p110_p10), %s979_s29, 1024 }
  0x13   : > { %p613_p12 = scmp.ne.s32.totalorder (!%p110_p10), %s979_s29, %s612_s5 }
  0x15   : > { %p614_p13 = pnand (!%p110_p10), %p613_p12, %p745_p4 }
  0x16   : > { %s133_s20 = scalar_select %p132_p11, %s682_s9, 1 }
  0x17   : > { %p615_p0 = pneg %p614_p13  ;;  %s692_s9 = smov [#allocation2]  }
  0x18   : > { %s553_s21 = sshll.u32 %s133_s20, 8  ;;  %s616_s12 = sshll.u32 %s692_s9, 4  ;;  %s617_s12 = int_to_ptr.vmem [resolvable:$false] %s616_s12 }
  0x19   : > { %s765_s24 = scalar_lea.vmem %s1047_s0, %s553_s21  ;;  %s618_s13 = scalar_lea.vmem %s617_s12, 2048 }
  0x1a   : > { %v140_v0 = vld [vmem:[%s765_s24] sm:$0xff]  ;;  %v142_v1 = vld [vmem:[%s765_s24 + $0x10] sm:$0xff]  ;;  %p619_p1 = scmp.lt.s32.totalorder %s979_s29, %s617_s12  ;;  %p620_p2 = scmp.lt.s32.totalorder %s618_s13, %s612_s5 }
  0x1b   : > { %v144_v2 = vld [vmem:[%s765_s24 + $0x20] sm:$0xff]  ;;  %v172_v3 = vadd.f32 %v142_v1, %v140_v0  ;;  %v146_v4 = vld [vmem:[%s765_s24 + $0x30] sm:$0xff] }
  0x1c   : > { %v176_v5 = vadd.f32 %v144_v2, %v142_v1  ;;  %v148_v6 = vld [vmem:[%s765_s24 + $0x40] sm:$0xff]  ;;  %v150_v7 = vld [vmem:[%s765_s24 + $0x50] sm:$0xff]  ;;  %p621_p3 = por %p620_p2, %p619_p1 }
  0x1d   : > { %v182_v8 = vadd.f32 %v148_v6, %v146_v4  ;;  %v152_v9 = vld [vmem:[%s765_s24 + $0x60] sm:$0xff]  ;;  %v154_v10 = vld [vmem:[%s765_s24 + $0x70] sm:$0xff]  ;;  %v777_v12 = vmul.f32 0.5, %v172_v3 }
  0x1e   : > { %v156_v11 = vld [vmem:[%s765_s24 + $0x80] sm:$0xff]  ;;  %v178_v13 = vadd.f32 %v176_v5, %v146_v4  ;;  %v188_v14 = vadd.f32 %v152_v9, %v150_v7  ;;  %v158_v15 = vld [vmem:[%s765_s24 + $0x90] sm:$0xff]  ;;  %v141_v5 = vld [vmem:[%s765_s24 + $0x8] sm:$0xff]  ;;  %p622_p5 = pnand %p621_p3, %p615_p0 }
  0x1f   : > { %v194_v16 = vadd.f32 %v156_v11, %v154_v10  ;;  %v160_v17 = vld [vmem:[%s765_s24 + $0xa0] sm:$0xff]  ;;  %v162_v18 = vld [vmem:[%s765_s24 + $0xb0] sm:$0xff]  ;;  %v184_v19 = vadd.f32 %v182_v8, %v150_v7  ;;  %v226_v24 = vrot.slane %v777_v12, 1  ;;  %v267_v52 = vrot.slane %v777_v12, 2  ;;  %v145_v11 = vld [vmem:[%s765_s24 + $0x28] sm:$0xff] }
  0x20   : > { %v200_v20 = vadd.f32 %v160_v17, %v158_v15  ;;  %v164_v21 = vld [vmem:[%s765_s24 + $0xc0] sm:$0xff]  ;;  %v166_v22 = vld [vmem:[%s765_s24 + $0xd0] sm:$0xff]  ;;  %v788_v25 = vmul.f32 0.33333334, %v178_v13  ;;  %v190_v26 = vadd.f32 %v188_v14, %v154_v10  ;;  %v143_v10 = vld [vmem:[%s765_s24 + $0x18] sm:$0xff] }
  0x21   : > { %v168_v23 = vld [vmem:[%s765_s24 + $0xe0] sm:$0xff]  ;;  %v196_v27 = vadd.f32 %v194_v16, %v158_v15  ;;  %v170_v28 = vld [vmem:[%s765_s24 + $0xf0] sm:$0xff]  ;;  %v791_v29 = vmul.f32 0.33333334, %v184_v19  ;;  %v206_v31 = vadd.f32 %v164_v21, %v162_v18  ;;  %v242_v33 = vadd.f32 %v226_v24, %v777_v12  ;;  %v147_v17 = vld [vmem:[%s765_s24 + $0x38] sm:$0xff] }
  0x22   : > { %v202_v30 = vadd.f32 %v200_v20, %v162_v18  ;;  %v212_v32 = vadd.f32 %v168_v23, %v166_v22  ;;  %v227_v34 = vrot.slane %v788_v25, 1  ;;  %v795_v35 = vmul.f32 0.33333334, %v190_v26  ;;  %v149_v18 = vld [vmem:[%s765_s24 + $0x48] sm:$0xff]  ;;  %v151_v19 = vld [vmem:[%s765_s24 + $0x58] sm:$0xff] }
  0x23   : > { %v797_v36 = vmul.f32 0.33333334, %v196_v27  ;;  %v228_v37 = vrot.slane %v791_v29, 1  ;;  %v208_v39 = vadd.f32 %v206_v31, %v166_v22  ;;  %v250_v41 = vmul.f32 0.5, %v242_v33  ;;  %v153_v24 = vld [vmem:[%s765_s24 + $0x68] sm:$0xff]  ;;  %v155_v26 = vld [vmem:[%s765_s24 + $0x78] sm:$0xff] }
  0x24   : > { %v800_v38 = vmul.f32 0.33333334, %v202_v30  ;;  %v214_v40 = vadd.f32 %v212_v32, %v170_v28  ;;  %v243_v42 = vadd.f32 %v227_v34, %v788_v25  ;;  %v229_v43 = vrot.slane %v795_v35, 1  ;;  %v157_v27 = vld [vmem:[%s765_s24 + $0x88] sm:$0xff] }
  0x25   : > { %v230_v44 = vrot.slane %v797_v36, 1  ;;  %v244_v45 = vadd.f32 %v228_v37, %v791_v29  ;;  %v807_v47 = vmul.f32 0.33333334, %v208_v39  ;;  %259 = vst.msk [vmem:[%s811_s27] sm:$0x1] %vm258_vm0, %v250_v41  ;;  %v283_v59 = vadd.f32 %v267_v52, %v242_v33  ;;  %v161_v41 = vld [vmem:[%s765_s24 + $0xa8] sm:$0xff] }
  0x26   : > { %v231_v46 = vrot.slane %v800_v38, 1  ;;  %v809_v48 = vmul.f32 0.33333334, %v214_v40  ;;  %v251_v49 = vmul.f32 0.5, %v243_v42  ;;  %v245_v50 = vadd.f32 %v229_v43, %v795_v35  ;;  %v159_v40 = vld [vmem:[%s765_s24 + $0x98] sm:$0xff] }
  0x27   : > { %v246_v51 = vadd.f32 %v230_v44, %v797_v36  ;;  %v252_v53 = vmul.f32 0.5, %v244_v45  ;;  %v232_v55 = vrot.slane %v807_v47, 1  ;;  %v268_v60 = vrot.slane %v788_v25, 2 }
  0x28   : > { %v247_v54 = vadd.f32 %v231_v46, %v800_v38  ;;  %v233_v56 = vrot.slane %v809_v48, 1  ;;  %260 = vst.msk [vmem:[%s811_s27 + $0x8] sm:$0x1] %vm258_vm0, %v251_v49  ;;  %v253_v57 = vmul.f32 0.5, %v245_v50  ;;  %v269_v0 = vrot.slane %v791_v29, 2  ;;  %v165_v49 = vld [vmem:[%s765_s24 + $0xc8] sm:$0xff] }
  0x29   : > { %v254_v58 = vmul.f32 0.5, %v246_v51  ;;  %261 = vst.msk [vmem:[%s811_s27 + $0x10] sm:$0x1] %vm258_vm0, %v252_v53  ;;  %v248_v62 = vadd.f32 %v232_v55, %v807_v47  ;;  %v291_v1 = vmul.f32 0.33333334, %v283_v59  ;;  %v284_v2 = vadd.f32 %v268_v60, %v243_v42  ;;  %v163_v42 = vld [vmem:[%s765_s24 + $0xb8] sm:$0xff] }
  0x2a   : > { %v255_v61 = vmul.f32 0.5, %v247_v54  ;;  %v249_v63 = vadd.f32 %v233_v56, %v809_v48  ;;  %262 = vst.msk [vmem:[%s811_s27 + $0x18] sm:$0x1] %vm258_vm0, %v253_v57  ;;  %v270_v3 = vrot.slane %v795_v35, 2  ;;  %v271_v4 = vrot.slane %v797_v36, 2 }
  0x2b   : > { %263 = vst.msk [vmem:[%s811_s27 + $0x20] sm:$0x1] %vm258_vm0, %v254_v58  ;;  %v256_v6 = vmul.f32 0.5, %v248_v62  ;;  %v285_v8 = vadd.f32 %v269_v0, %v244_v45  ;;  %v272_v9 = vrot.slane %v800_v38, 2  ;;  %v292_v13 = vmul.f32 0.33333334, %v284_v2 }
  0x2c   : > { %264 = vst.msk [vmem:[%s811_s27 + $0x28] sm:$0x1] %vm258_vm0, %v255_v61  ;;  %v257_v7 = vmul.f32 0.5, %v249_v63  ;;  %v286_v14 = vadd.f32 %v270_v3, %v245_v50  ;;  %v287_v15 = vadd.f32 %v271_v4, %v246_v51  ;;  %v273_v16 = vrot.slane %v807_v47, 2  ;;  %v167_v50 = vld [vmem:[%s765_s24 + $0xd8] sm:$0xff]  ;;  %v169_v51 = vld [vmem:[%s765_s24 + $0xe8] sm:$0xff] }
  0x2d   : > { %300 = vst.msk [vmem:[%s811_s27] sm:$0x2] %vm299_vm1, %v291_v1  ;;  %v293_v20 = vmul.f32 0.33333334, %v285_v8  ;;  %v288_v21 = vadd.f32 %v272_v9, %v247_v54  ;;  %v274_v22 = vrot.slane %v809_v48, 2  ;;  %v173_v23 = vadd.f32 %v143_v10, %v141_v5 }
  0x2e   : > { %309 = vst.msk [vmem:[%s811_s27 - $0x1] sm:$0x8] %vm308_vm2, %v291_v1  ;;  %v294_v28 = vmul.f32 0.33333334, %v286_v14  ;;  %v295_v30 = vmul.f32 0.33333334, %v287_v15  ;;  %v289_v31 = vadd.f32 %v273_v16, %v248_v62  ;;  %v177_v32 = vadd.f32 %v145_v11, %v143_v10 }
  0x2f   : > { %318 = vst.msk [vmem:[%s811_s27 - $0x2] sm:$0x20] %vm317_vm3, %v291_v1  ;;  %319 = vst.msk [vmem:[%s811_s27 + $0x6] sm:$0x20] %vm317_vm3, %v292_v13  ;;  %v296_v33 = vmul.f32 0.33333334, %v288_v21  ;;  %v290_v34 = vadd.f32 %v274_v22, %v249_v63  ;;  %v183_v39 = vadd.f32 %v149_v18, %v147_v17  ;;  %v189_v45 = vadd.f32 %v153_v24, %v151_v19 }
  0x30   : > { %265 = vst.msk [vmem:[%s811_s27 + $0x30] sm:$0x1] %vm258_vm0, %v256_v6  ;;  %266 = vst.msk [vmem:[%s811_s27 + $0x38] sm:$0x1] %vm258_vm0, %v257_v7  ;;  %v871_v37 = vmul.f32 0.5, %v173_v23  ;;  %v179_v44 = vadd.f32 %v177_v32, %v147_v17  ;;  %v195_v46 = vadd.f32 %v157_v27, %v155_v26  ;;  %v201_v59 = vadd.f32 %v161_v41, %v159_v40  ;;  %v171_v11 = vld [vmem:[%s765_s24 + $0xf8] sm:$0xff] }
  0x31   : > { %301 = vst.msk [vmem:[%s811_s27 + $0x8] sm:$0x2] %vm299_vm1, %v292_v13  ;;  %302 = vst.msk [vmem:[%s811_s27 + $0x10] sm:$0x2] %vm299_vm1, %v293_v20  ;;  %v297_v43 = vmul.f32 0.33333334, %v289_v31  ;;  %v185_v55 = vadd.f32 %v183_v39, %v151_v19  ;;  %v191_v57 = vadd.f32 %v189_v45, %v155_v26  ;;  %v207_v62 = vadd.f32 %v165_v49, %v163_v42 }
  0x32   : > { %310 = vst.msk [vmem:[%s811_s27 + $0x7] sm:$0x8] %vm308_vm2, %v292_v13  ;;  %311 = vst.msk [vmem:[%s811_s27 + $0xf] sm:$0x8] %vm308_vm2, %v293_v20  ;;  %v298_v52 = vmul.f32 0.33333334, %v290_v34  ;;  %v197_v58 = vadd.f32 %v195_v46, %v159_v40  ;;  %v213_v63 = vadd.f32 %v169_v51, %v167_v50  ;;  %v203_v7 = vadd.f32 %v201_v59, %v163_v42 }
  0x33   : > { %320 = vst.msk [vmem:[%s811_s27 + $0xe] sm:$0x20] %vm317_vm3, %v293_v20  ;;  %321 = vst.msk [vmem:[%s811_s27 + $0x16] sm:$0x20] %vm317_vm3, %v294_v28  ;;  %v334_v53 = vrot.slane %v871_v37, 1  ;;  %v358_v54 = vrot.slane %v871_v37, 2  ;;  %v209_v20 = vadd.f32 %v207_v62, %v167_v50 }
  0x34   : > { %303 = vst.msk [vmem:[%s811_s27 + $0x18] sm:$0x2] %vm299_vm1, %v294_v28  ;;  %304 = vst.msk [vmem:[%s811_s27 + $0x20] sm:$0x2] %vm299_vm1, %v295_v30  ;;  %v905_v56 = vmul.f32 0.33333334, %v179_v44  ;;  %v215_v23 = vadd.f32 %v213_v63, %v171_v11 }
  0x35   : > { %312 = vst.msk [vmem:[%s811_s27 + $0x17] sm:$0x8] %vm308_vm2, %v294_v28  ;;  %313 = vst.msk [vmem:[%s811_s27 + $0x1f] sm:$0x8] %vm308_vm2, %v295_v30  ;;  %v350_v60 = vadd.f32 %v334_v53, %v777_v12  ;;  %v187_v61 = vmul.f32 0.33333334, %v185_v55 }
  0x36   : > { %322 = vst.msk [vmem:[%s811_s27 + $0x1e] sm:$0x20] %vm317_vm3, %v295_v30  ;;  %323 = vst.msk [vmem:[%s811_s27 + $0x26] sm:$0x20] %vm317_vm3, %v296_v33  ;;  %v335_v0 = vrot.slane %v905_v56, 1  ;;  %v359_v1 = vrot.slane %v905_v56, 2 }
  0x37   : > { %305 = vst.msk [vmem:[%s811_s27 + $0x28] sm:$0x2] %vm299_vm1, %v296_v33  ;;  %306 = vst.msk [vmem:[%s811_s27 + $0x30] sm:$0x2] %vm299_vm1, %v297_v43  ;;  %v193_v2 = vmul.f32 0.33333334, %v191_v57  ;;  %v374_v4 = vadd.f32 %v358_v54, %v350_v60 }
  0x38   : > { %314 = vst.msk [vmem:[%s811_s27 + $0x27] sm:$0x8] %vm308_vm2, %v296_v33  ;;  %315 = vst.msk [vmem:[%s811_s27 + $0x2f] sm:$0x8] %vm308_vm2, %v297_v43  ;;  %v199_v3 = vmul.f32 0.33333334, %v197_v58  ;;  %v351_v8 = vadd.f32 %v335_v0, %v788_v25 }
  0x39   : > { %324 = vst.msk [vmem:[%s811_s27 + $0x2e] sm:$0x20] %vm317_vm3, %v297_v43  ;;  %325 = vst.msk [vmem:[%s811_s27 + $0x36] sm:$0x20] %vm317_vm3, %v298_v52  ;;  %v336_v5 = vrot.slane %v187_v61, 1  ;;  %v360_v6 = vrot.slane %v187_v61, 2 }
  0x3a   : > { %307 = vst.msk [vmem:[%s811_s27 + $0x38] sm:$0x2] %vm299_vm1, %v298_v52  ;;  %v337_v9 = vrot.slane %v193_v2, 1  ;;  %v361_v10 = vrot.slane %v193_v2, 2  ;;  %v338_v12 = vrot.slane %v199_v3, 1  ;;  %v362_v15 = vrot.slane %v199_v3, 2 }
  0x3b   : > { %316 = vst.msk [vmem:[%s811_s27 + $0x37] sm:$0x8] %vm308_vm2, %v298_v52  ;;  %v382_v13 = vmul.f32 0.33333334, %v374_v4  ;;  %v352_v14 = vadd.f32 %v336_v5, %v791_v29  ;;  %v205_v16 = vmul.f32 0.33333334, %v203_v7  ;;  %v375_v17 = vadd.f32 %v359_v1, %v351_v8 }
  0x3c   : > { %v353_v18 = vadd.f32 %v337_v9, %v795_v35  ;;  %v354_v19 = vadd.f32 %v338_v12, %v797_v36  ;;  %v211_v29 = vmul.f32 0.33333334, %v209_v20  ;;  %v217_v30 = vmul.f32 0.33333334, %v215_v23 }
  0x3d   : > { %391 = vst.msk [vmem:[%s811_s27 - $0x3] sm:$0x80] %vm390_vm4, %v382_v13  ;;  %v376_v21 = vadd.f32 %v360_v6, %v352_v14  ;;  %v339_v25 = vrot.slane %v205_v16, 1  ;;  %v363_v22 = vrot.slane %v205_v16, 2  ;;  %v383_v24 = vmul.f32 0.33333334, %v375_v17 }
  0x3e   : > { %v377_v26 = vadd.f32 %v361_v10, %v353_v18  ;;  %v378_v27 = vadd.f32 %v362_v15, %v354_v19  ;;  %v399_v36 = vadd.f32 %v334_v53, %v871_v37  ;;  %v340_v33 = vrot.slane %v211_v29, 1 }
  0x3f   : > { %v384_v28 = vmul.f32 0.33333334, %v376_v21  ;;  %v355_v35 = vadd.f32 %v339_v25, %v800_v38  ;;  %392 = vst.msk [vmem:[%s811_s27 + $0x5] sm:$0x80] %vm390_vm4, %v383_v24  ;;  %v364_v34 = vrot.slane %v211_v29, 2  ;;  %v341_v40 = vrot.slane %v217_v30, 1 }
  0x40   : > { %v385_v31 = vmul.f32 0.33333334, %v377_v26  ;;  %v386_v32 = vmul.f32 0.33333334, %v378_v27  ;;  %v365_v41 = vrot.slane %v217_v30, 2  ;;  %v407_v42 = vadd.f32 %v399_v36, %v358_v54 }
  0x41   : > { %393 = vst.msk [vmem:[%s811_s27 + $0xd] sm:$0x80] %vm390_vm4, %v384_v28  ;;  %v379_v39 = vadd.f32 %v363_v22, %v355_v35  ;;  %v356_v38 = vadd.f32 %v340_v33, %v807_v47  ;;  %v400_v37 = vadd.f32 %v335_v0, %v905_v56  ;;  %v401_v43 = vadd.f32 %v336_v5, %v187_v61 }
  0x42   : > { %394 = vst.msk [vmem:[%s811_s27 + $0x15] sm:$0x80] %vm390_vm4, %v385_v31  ;;  %395 = vst.msk [vmem:[%s811_s27 + $0x1d] sm:$0x80] %vm390_vm4, %v386_v32  ;;  %v402_v44 = vadd.f32 %v337_v9, %v193_v2  ;;  %v357_v46 = vadd.f32 %v341_v40, %v809_v48  ;;  %v415_v49 = vmul.f32 0.33333334, %v407_v42  ;;  %v403_v50 = vadd.f32 %v338_v12, %v199_v3 }
  0x43   : > { %v387_v45 = vmul.f32 0.33333334, %v379_v39  ;;  %v380_v51 = vadd.f32 %v364_v34, %v356_v38  ;;  %v408_v52 = vadd.f32 %v400_v37, %v359_v1  ;;  %v409_v53 = vadd.f32 %v401_v43, %v360_v6 }
  0x44   : > { %v410_v54 = vadd.f32 %v402_v44, %v361_v10  ;;  %v381_v55 = vadd.f32 %v365_v41, %v357_v46  ;;  %423 = vst.msk [vmem:[%s811_s27 + $0x4] sm:$0x2] %vm299_vm1, %v415_v49  ;;  %v411_v47 = vadd.f32 %v403_v50, %v362_v15  ;;  %v404_v48 = vadd.f32 %v339_v25, %v205_v16 }
  0x45   : > { %396 = vst.msk [vmem:[%s811_s27 + $0x25] sm:$0x80] %vm390_vm4, %v387_v45  ;;  %v405_v56 = vadd.f32 %v340_v33, %v211_v29  ;;  %v388_v57 = vmul.f32 0.33333334, %v380_v51  ;;  %v416_v58 = vmul.f32 0.33333334, %v408_v52  ;;  %v406_v60 = vadd.f32 %v341_v40, %v217_v30 }
  0x46   : > { %431 = vst.msk [vmem:[%s811_s27 + $0x3] sm:$0x8] %vm308_vm2, %v415_v49  ;;  %v417_v59 = vmul.f32 0.33333334, %v409_v53  ;;  %v389_v61 = vmul.f32 0.33333334, %v381_v55  ;;  %v412_v0 = vadd.f32 %v404_v48, %v363_v22 }
  0x47   : > { %439 = vst.msk [vmem:[%s811_s27 + $0x2] sm:$0x20] %vm317_vm3, %v415_v49  ;;  %v418_v62 = vmul.f32 0.33333334, %v410_v54  ;;  %v419_v63 = vmul.f32 0.33333334, %v411_v47  ;;  %v413_v1 = vadd.f32 %v405_v56, %v364_v34  ;;  %v414_v2 = vadd.f32 %v406_v60, %v365_v41 }
  0x48   : > { %397 = vst.msk [vmem:[%s811_s27 + $0x2d] sm:$0x80] %vm390_vm4, %v388_v57  ;;  %398 = vst.msk [vmem:[%s811_s27 + $0x35] sm:$0x80] %vm390_vm4, %v389_v61  ;;  %v420_v3 = vmul.f32 0.33333334, %v412_v0 }
  0x49   : > { %424 = vst.msk [vmem:[%s811_s27 + $0xc] sm:$0x2] %vm299_vm1, %v416_v58  ;;  %425 = vst.msk [vmem:[%s811_s27 + $0x14] sm:$0x2] %vm299_vm1, %v417_v59  ;;  %v421_v4 = vmul.f32 0.33333334, %v413_v1 }
  0x4a   : > { %432 = vst.msk [vmem:[%s811_s27 + $0xb] sm:$0x8] %vm308_vm2, %v416_v58  ;;  %433 = vst.msk [vmem:[%s811_s27 + $0x13] sm:$0x8] %vm308_vm2, %v417_v59  ;;  %v422_v5 = vmul.f32 0.33333334, %v414_v2 }
  0x4b   : > { %440 = vst.msk [vmem:[%s811_s27 + $0xa] sm:$0x20] %vm317_vm3, %v416_v58  ;;  %441 = vst.msk [vmem:[%s811_s27 + $0x12] sm:$0x20] %vm317_vm3, %v417_v59 }
  0x4c   : > { %426 = vst.msk [vmem:[%s811_s27 + $0x1c] sm:$0x2] %vm299_vm1, %v418_v62  ;;  %427 = vst.msk [vmem:[%s811_s27 + $0x24] sm:$0x2] %vm299_vm1, %v419_v63 }
  0x4d   : > { %434 = vst.msk [vmem:[%s811_s27 + $0x1b] sm:$0x8] %vm308_vm2, %v418_v62  ;;  %435 = vst.msk [vmem:[%s811_s27 + $0x23] sm:$0x8] %vm308_vm2, %v419_v63 }
  0x4e   : > { %442 = vst.msk [vmem:[%s811_s27 + $0x1a] sm:$0x20] %vm317_vm3, %v418_v62  ;;  %443 = vst.msk [vmem:[%s811_s27 + $0x22] sm:$0x20] %vm317_vm3, %v419_v63 }
  0x4f   : > { %428 = vst.msk [vmem:[%s811_s27 + $0x2c] sm:$0x2] %vm299_vm1, %v420_v3  ;;  %429 = vst.msk [vmem:[%s811_s27 + $0x34] sm:$0x2] %vm299_vm1, %v421_v4 }
  0x50   : > { %436 = vst.msk [vmem:[%s811_s27 + $0x2b] sm:$0x8] %vm308_vm2, %v420_v3  ;;  %437 = vst.msk [vmem:[%s811_s27 + $0x33] sm:$0x8] %vm308_vm2, %v421_v4 }
  0x51   : > { %444 = vst.msk [vmem:[%s811_s27 + $0x2a] sm:$0x20] %vm317_vm3, %v420_v3  ;;  %445 = vst.msk [vmem:[%s811_s27 + $0x32] sm:$0x20] %vm317_vm3, %v421_v4 }
  0x52   : > { %430 = vst.msk [vmem:[%s811_s27 + $0x3c] sm:$0x2] %vm299_vm1, %v422_v5 }
  0x53   : > { %438 = vst.msk [vmem:[%s811_s27 + $0x3b] sm:$0x8] %vm308_vm2, %v422_v5 }
  0x54   : > { %446 = vst.msk [vmem:[%s811_s27 + $0x3a] sm:$0x20] %vm317_vm3, %v422_v5 }
  0x55   : > { %625 = shalt.err (!%p622_p5)
}
  0x56   : > { %s626_s15 = scalar_lea.hbm %s977_s3, 1024  ;;  %s630_s21 = scalar_lea.hbm %s1048_s1, 2048 }
  0x57   : > { %p627_p6 = scmp.ne.s32.totalorder %s977_s3, %s626_s15  ;;  %p631_p10 = scmp.lt.u32.totalorder %s977_s3, %s1048_s1 }
  0x58   : > { %p632_p11 = scmp.lt.u32.totalorder %s630_s21, %s626_s15  ;;  %p634_p13 = scmp.lt.u32.totalorder %s626_s15, %s977_s3 }
  0x59   : > { %p628_p7 = pnand %p627_p6, %p745_p4 }
  0x5a   : > { %p633_p12 = por %p632_p11, %p631_p10 }
  0x5b   : > { %p629_p9 = pneg %p628_p7 }
  0x5c   : > { %p635_p0 = por %p634_p13, %p633_p12 }
  0x5e   : > { %p636_p1 = pnand %p635_p0, %p629_p9 }
  0x60   : > { %639 = shalt.err (!%p636_p1)
}
  0x61   : > { %s693_s24 = smov 128   ;;  %s694_s25 = smov 8  }
  0x62   : > { %555 = dma.vmem_to_hbm [thread:$0]  (%p745_p4), %s979_s29, 1024, %s977_s3, %s1001_s4, %s693_s24, %s693_s24, %s694_s25  }
  0x63 PF: > { %p561_p2 = scmp.ge.s32.totalorder %s690_s11, 2  ;;  %s477_s26 = sand.u32 1, %s670_s6  }
  0x64   : > { %s478_s27 = scalar_lea.sflag [#allocation3], %s477_s26 }
  0x65   : > { %p558_p3 = pnand %p561_p2, %p752_p8 }
  0x67   : > { %665 = dma.done.wait (!%p558_p3), %s478_s27, 1024  }
  0x68   : > { %667 = vsyncadd (!%p558_p3), %s478_s27, 4294966272  ;;  %s14_s11 = sadd.s32 1, %s690_s11   ;;  %s1051_s6 = smov %s674_s7 }
  0x69   : > { %p11_p5 = scmp.ge.s32.totalorder %s14_s11, 4   ;;  %s1052_s7 = smov %s678_s8 }
  0x6a   : > { %s1053_s8 = smov %s758_s19  ;;  %s1054_s9 = smov %s686_s10 }
  0x6b   : > { %s1055_s10 = smov %s1057_s14  ;;  %13 = sbr.rel (!%p11_p5) target bundleno = 4 (0x4), region = 59 }
  0x72   :  { %483 = vsyncpa [#allocation3], 1 }
  0x73   :  { %485 = vsyncpa [#allocation3 + $0x1], 1 }

</bundles_post_ra>
